<compile_context>
chip_gen: v7x
topology: tpu7x:2x2x1
jax: 0.10.0
libtpu: 0.0.40
codegen_flags: <defaults>
</compile_context>

<pallas_src>
import math

import jax
import jax.numpy as jnp
from jax.experimental import pallas as pl
from jax.experimental.pallas import tpu as pltpu


_SQRT_2_OVER_PI = 0.7978845608028654
_GELU_COEF = 0.044715 * _SQRT_2_OVER_PI      # folded: 0.044715 * sqrt(2/pi)


def _linear_gelu_kernel(w_ref, b_ref, x_ref, o_ref):
    """w_ref: (Dout, F) f32 in SMEM; b_ref: (Dout,) f32 in SMEM;
    x_ref: (F, TR, LANE) VMEM block; o_ref: (Dout, TR, LANE) VMEM block."""
    f_dim = x_ref.shape[0]          # == 3 (compile-time constant)
    d_dim = o_ref.shape[0]          # == 10 (compile-time constant)

    # Dense (TR, LANE) input slabs, reused across all output rows.
    xs = [x_ref[f].astype(jnp.float32) for f in range(f_dim)]

    for d in range(d_dim):          # unrolled over the 10 output features
        # K=3 contraction as scalar-operand VPU FMAs; bias seeds the sum.
        y = xs[0] * w_ref[d, 0] + b_ref[d]
        for f in range(1, f_dim):
            y = y + xs[f] * w_ref[d, f]

        # tanh-GELU epilogue (matches the module); tanh runs on the EUP slot.
        t = y * y
        inner = y * (_SQRT_2_OVER_PI + _GELU_COEF * t)
        o_ref[d] = (0.5 * y * (jnp.tanh(inner) + 1.0)).astype(o_ref.dtype)


def model_forward(x, w, b, *, lane_max=512, rows_max=64):
    """x: (N, C, H, F); w: (F, Dout); b: (Dout,).
    Returns tanh-GELU(first chunk of chunk(Linear(x), 4, dim=1)),
    shape (N, ceil(C/4), H, Dout)."""
    N, C, H, F = x.shape
    Dout = w.shape[1]
    c1 = min(-(-C // 4), C)            # torch.chunk(4, dim=1) first-chunk size
    M = N * c1 * H

    # ---- dense (8,128)-aligned 3-D tiling over the big M axis --------------
    LANE = max(128, min(lane_max, pl.cdiv(M, 128) * 128))
    LANE = (LANE // 128) * 128                     # lane dim, multiple of 128
    R = pl.cdiv(M, LANE)                           # rows of LANE elements
    TR = max(8, (min(rows_max, pl.cdiv(R, 8) * 8) // 8) * 8)  # rows per step
    # v7x megacore: keep >= 2 grid steps when there is enough work so the
    # "parallel" grid axis actually shards across both TensorCores.
    if pl.cdiv(R, TR) < 2 and pl.cdiv(R, 8) * 8 >= 16:
        TR = max(8, ((pl.cdiv(R, 8) * 8) // 16) * 8)
    Rp = pl.cdiv(R, TR) * TR
    Mp = Rp * LANE

    # Lane-dense plumbing: slice only the consumed channel chunk, transpose so
    # M is the trailing axis, pad to whole (TR, LANE) tiles, reshape to 3-D.
    # XLA fuses slice + transpose + pad + reshape into a single copy.
    xt = jnp.moveaxis(x[:, :c1], -1, 0).reshape(F, M)           # (F, M)
    if Mp != M:
        xt = jnp.pad(xt, ((0, 0), (0, Mp - M)))                 # zero pad
    xt3 = xt.reshape(F, Rp, LANE)                               # (F, Rp, LANE)

    wt = jnp.asarray(w, jnp.float32).T                          # (Dout, F)
    bv = jnp.asarray(b, jnp.float32).reshape(Dout)              # (Dout,)

    out3 = pl.pallas_call(
        _linear_gelu_kernel,
        out_shape=jax.ShapeDtypeStruct((Dout, Rp, LANE), x.dtype),
        grid=(Rp // TR,),
        in_specs=[
            pl.BlockSpec(memory_space=pltpu.MemorySpace.SMEM),   # w: 30 scalars
            pl.BlockSpec(memory_space=pltpu.MemorySpace.SMEM),   # b: 10 scalars
            pl.BlockSpec((F, TR, LANE), lambda i: (0, i, 0)),    # x, streamed
        ],
        out_specs=pl.BlockSpec((Dout, TR, LANE), lambda i: (0, i, 0)),
        compiler_params=pltpu.CompilerParams(
            dimension_semantics=("parallel",),
        ),
    )(wt, bv, xt3)

    out = out3.reshape(Dout, Mp)[:, :M]              # drop zero padding
    # NOTE: this final transpose is an extra HBM copy; a consumer that accepts
    # the lane-dense (Dout, ...) layout should fuse/skip it.
    return jnp.moveaxis(out.reshape(Dout, N, c1, H), 0, -1)  # (N, c1, H, Dout)


def _reference(x, w, b):
    c1 = min(-(-x.shape[1] // 4), x.shape[1])
    y = jnp.einsum("nchf,fd->nchd", x, w) + b
    v1 = y[:, :c1]
    v5 = v1 * 0.5
    v6 = v1 + v1 * v1 * v1 * 0.044715
    v7 = v6 * 0.7978845608028654
    v8 = jnp.tanh(v7)
    return v5 * (v8 + 1.0)


if __name__ == "__main__":
    key = jax.random.PRNGKey(0)
    kx, kw, kb = jax.random.split(key, 3)

    # Small shapes consistent with the module: last dim = in_features = 3.
    N, C, H, F, Dout = 2, 8, 16, 3, 10
    x = jax.random.normal(kx, (N, C, H, F), dtype=jnp.float32)

    # Deterministic Linear(3, 10) params (PyTorch-style uniform init bound).
    bound = 1.0 / math.sqrt(F)
    w = jax.random.uniform(kw, (F, Dout), jnp.float32, -bound, bound)
    b = jax.random.uniform(kb, (Dout,), jnp.float32, -bound, bound)

    out = jax.block_until_ready(model_forward(x, w, b))
    ref = _reference(x, w, b)
    assert out.shape == ref.shape, (out.shape, ref.shape)
    assert jnp.allclose(out, ref, atol=2e-5, rtol=2e-5), float(
        jnp.max(jnp.abs(out - ref)))

    # Second check: ragged M (padding path) and >= 2 grid steps (megacore split).
    x2 = jax.random.normal(kx, (2, 8, 500, F), dtype=jnp.float32)
    out2 = jax.block_until_ready(
        model_forward(x2, w, b, lane_max=128, rows_max=8))
    ref2 = _reference(x2, w, b)
    assert out2.shape == ref2.shape, (out2.shape, ref2.shape)
    assert jnp.allclose(out2, ref2, atol=2e-5, rtol=2e-5), float(
        jnp.max(jnp.abs(out2 - ref2)))

    print("KERNEL_OK")
</pallas_src>

<mosaic_0001>
module attributes {stable_mosaic.version = 11 : i64} {
  func.func @_linear_gelu_kernel(%arg0: i32, %arg1: memref<10x3xf32, #tpu.memory_space<smem>>, %arg2: memref<10xf32, #tpu.memory_space<smem>>, %arg3: memref<3x8x128xf32, #tpu.memory_space<vmem>>, %arg4: memref<10x8x128xf32, #tpu.memory_space<vmem>>) attributes {dimension_semantics = [#tpu.dimension_semantics<parallel>], iteration_bounds = array<i64: 1>, scalar_prefetch = 0 : i64, scratch_operands = 0 : i64, tpu.core_type = #tpu.core_type<tc>, window_params = [{transform_indices = @transform_0, window_bounds = array<i64: 10, 3>}, {transform_indices = @transform_1, window_bounds = array<i64: 10>}, {transform_indices = @transform_2, window_bounds = array<i64: 3, 8, 128>}, {transform_indices = @transform_3, window_bounds = array<i64: 10, 8, 128>}]} {
    %c0 = arith.constant 0 : index
    %c0_0 = arith.constant 0 : index
    %c0_1 = arith.constant 0 : index
    %0 = vector.load %arg3[%c0, %c0_0, %c0_1] : memref<3x8x128xf32, #tpu.memory_space<vmem>>, vector<1x8x128xf32>
    %1 = vector.shape_cast %0 : vector<1x8x128xf32> to vector<8x128xf32>
    %c1 = arith.constant 1 : index
    %c0_2 = arith.constant 0 : index
    %c0_3 = arith.constant 0 : index
    %2 = vector.load %arg3[%c1, %c0_2, %c0_3] : memref<3x8x128xf32, #tpu.memory_space<vmem>>, vector<1x8x128xf32>
    %3 = vector.shape_cast %2 : vector<1x8x128xf32> to vector<8x128xf32>
    %c2 = arith.constant 2 : index
    %c0_4 = arith.constant 0 : index
    %c0_5 = arith.constant 0 : index
    %4 = vector.load %arg3[%c2, %c0_4, %c0_5] : memref<3x8x128xf32, #tpu.memory_space<vmem>>, vector<1x8x128xf32>
    %5 = vector.shape_cast %4 : vector<1x8x128xf32> to vector<8x128xf32>
    %c0_6 = arith.constant 0 : index
    %c0_7 = arith.constant 0 : index
    %6 = memref.load %arg1[%c0_6, %c0_7] : memref<10x3xf32, #tpu.memory_space<smem>>
    %7 = vector.broadcast %6 : f32 to vector<8x128xf32>
    %8 = arith.mulf %1, %7 : vector<8x128xf32>
    %c0_8 = arith.constant 0 : index
    %9 = memref.load %arg2[%c0_8] : memref<10xf32, #tpu.memory_space<smem>>
    %10 = vector.broadcast %9 : f32 to vector<8x128xf32>
    %11 = arith.addf %8, %10 : vector<8x128xf32>
    %c0_9 = arith.constant 0 : index
    %c1_10 = arith.constant 1 : index
    %12 = memref.load %arg1[%c0_9, %c1_10] : memref<10x3xf32, #tpu.memory_space<smem>>
    %13 = vector.broadcast %12 : f32 to vector<8x128xf32>
    %14 = arith.mulf %3, %13 : vector<8x128xf32>
    %15 = arith.addf %11, %14 : vector<8x128xf32>
    %c0_11 = arith.constant 0 : index
    %c2_12 = arith.constant 2 : index
    %16 = memref.load %arg1[%c0_11, %c2_12] : memref<10x3xf32, #tpu.memory_space<smem>>
    %17 = vector.broadcast %16 : f32 to vector<8x128xf32>
    %18 = arith.mulf %5, %17 : vector<8x128xf32>
    %19 = arith.addf %15, %18 : vector<8x128xf32>
    %20 = arith.mulf %19, %19 : vector<8x128xf32>
    %cst = arith.constant 0.0356774069 : f32
    %21 = vector.broadcast %cst : f32 to vector<8x128xf32>
    %22 = arith.mulf %21, %20 : vector<8x128xf32>
    %cst_13 = arith.constant 0.797884583 : f32
    %23 = vector.broadcast %cst_13 : f32 to vector<8x128xf32>
    %24 = arith.addf %23, %22 : vector<8x128xf32>
    %25 = arith.mulf %19, %24 : vector<8x128xf32>
    %cst_14 = arith.constant 5.000000e-01 : f32
    %26 = vector.broadcast %cst_14 : f32 to vector<8x128xf32>
    %27 = arith.mulf %26, %19 : vector<8x128xf32>
    %28 = math.tanh %25 : vector<8x128xf32>
    %cst_15 = arith.constant 1.000000e+00 : f32
    %29 = vector.broadcast %cst_15 : f32 to vector<8x128xf32>
    %30 = arith.addf %28, %29 : vector<8x128xf32>
    %31 = arith.mulf %27, %30 : vector<8x128xf32>
    %c0_16 = arith.constant 0 : index
    %c0_17 = arith.constant 0 : index
    %c0_18 = arith.constant 0 : index
    %32 = vector.load %arg4[%c0_16, %c0_17, %c0_18] : memref<10x8x128xf32, #tpu.memory_space<vmem>>, vector<1x8x128xf32>
    %33 = vector.shape_cast %32 : vector<1x8x128xf32> to vector<8x128xf32>
    %34 = vector.shape_cast %31 : vector<8x128xf32> to vector<1x8x128xf32>
    tpu.vector_store %arg4[%c0_16, %c0_17, %c0_18], %34 {strides = array<i32>} : memref<10x8x128xf32, #tpu.memory_space<vmem>>, vector<1x8x128xf32>,
    %c1_19 = arith.constant 1 : index
    %c0_20 = arith.constant 0 : index
    %35 = memref.load %arg1[%c1_19, %c0_20] : memref<10x3xf32, #tpu.memory_space<smem>>
    %36 = vector.broadcast %35 : f32 to vector<8x128xf32>
    %37 = arith.mulf %1, %36 : vector<8x128xf32>
    %c1_21 = arith.constant 1 : index
    %38 = memref.load %arg2[%c1_21] : memref<10xf32, #tpu.memory_space<smem>>
    %39 = vector.broadcast %38 : f32 to vector<8x128xf32>
    %40 = arith.addf %37, %39 : vector<8x128xf32>
    %c1_22 = arith.constant 1 : index
    %c1_23 = arith.constant 1 : index
    %41 = memref.load %arg1[%c1_22, %c1_23] : memref<10x3xf32, #tpu.memory_space<smem>>
    %42 = vector.broadcast %41 : f32 to vector<8x128xf32>
    %43 = arith.mulf %3, %42 : vector<8x128xf32>
    %44 = arith.addf %40, %43 : vector<8x128xf32>
    %c1_24 = arith.constant 1 : index
    %c2_25 = arith.constant 2 : index
    %45 = memref.load %arg1[%c1_24, %c2_25] : memref<10x3xf32, #tpu.memory_space<smem>>
    %46 = vector.broadcast %45 : f32 to vector<8x128xf32>
    %47 = arith.mulf %5, %46 : vector<8x128xf32>
    %48 = arith.addf %44, %47 : vector<8x128xf32>
    %49 = arith.mulf %48, %48 : vector<8x128xf32>
    %cst_26 = arith.constant 0.0356774069 : f32
    %50 = vector.broadcast %cst_26 : f32 to vector<8x128xf32>
    %51 = arith.mulf %50, %49 : vector<8x128xf32>
    %cst_27 = arith.constant 0.797884583 : f32
    %52 = vector.broadcast %cst_27 : f32 to vector<8x128xf32>
    %53 = arith.addf %52, %51 : vector<8x128xf32>
    %54 = arith.mulf %48, %53 : vector<8x128xf32>
    %cst_28 = arith.constant 5.000000e-01 : f32
    %55 = vector.broadcast %cst_28 : f32 to vector<8x128xf32>
    %56 = arith.mulf %55, %48 : vector<8x128xf32>
    %57 = math.tanh %54 : vector<8x128xf32>
    %cst_29 = arith.constant 1.000000e+00 : f32
    %58 = vector.broadcast %cst_29 : f32 to vector<8x128xf32>
    %59 = arith.addf %57, %58 : vector<8x128xf32>
    %60 = arith.mulf %56, %59 : vector<8x128xf32>
    %c1_30 = arith.constant 1 : index
    %c0_31 = arith.constant 0 : index
    %c0_32 = arith.constant 0 : index
    %61 = vector.load %arg4[%c1_30, %c0_31, %c0_32] : memref<10x8x128xf32, #tpu.memory_space<vmem>>, vector<1x8x128xf32>
    %62 = vector.shape_cast %61 : vector<1x8x128xf32> to vector<8x128xf32>
    %63 = vector.shape_cast %60 : vector<8x128xf32> to vector<1x8x128xf32>
    tpu.vector_store %arg4[%c1_30, %c0_31, %c0_32], %63 {strides = array<i32>} : memref<10x8x128xf32, #tpu.memory_space<vmem>>, vector<1x8x128xf32>,
    %c2_33 = arith.constant 2 : index
    %c0_34 = arith.constant 0 : index
    %64 = memref.load %arg1[%c2_33, %c0_34] : memref<10x3xf32, #tpu.memory_space<smem>>
    %65 = vector.broadcast %64 : f32 to vector<8x128xf32>
    %66 = arith.mulf %1, %65 : vector<8x128xf32>
    %c2_35 = arith.constant 2 : index
    %67 = memref.load %arg2[%c2_35] : memref<10xf32, #tpu.memory_space<smem>>
    %68 = vector.broadcast %67 : f32 to vector<8x128xf32>
    %69 = arith.addf %66, %68 : vector<8x128xf32>
    %c2_36 = arith.constant 2 : index
    %c1_37 = arith.constant 1 : index
    %70 = memref.load %arg1[%c2_36, %c1_37] : memref<10x3xf32, #tpu.memory_space<smem>>
    %71 = vector.broadcast %70 : f32 to vector<8x128xf32>
    %72 = arith.mulf %3, %71 : vector<8x128xf32>
    %73 = arith.addf %69, %72 : vector<8x128xf32>
    %c2_38 = arith.constant 2 : index
    %c2_39 = arith.constant 2 : index
    %74 = memref.load %arg1[%c2_38, %c2_39] : memref<10x3xf32, #tpu.memory_space<smem>>
    %75 = vector.broadcast %74 : f32 to vector<8x128xf32>
    %76 = arith.mulf %5, %75 : vector<8x128xf32>
    %77 = arith.addf %73, %76 : vector<8x128xf32>
    %78 = arith.mulf %77, %77 : vector<8x128xf32>
    %cst_40 = arith.constant 0.0356774069 : f32
    %79 = vector.broadcast %cst_40 : f32 to vector<8x128xf32>
    %80 = arith.mulf %79, %78 : vector<8x128xf32>
    %cst_41 = arith.constant 0.797884583 : f32
    %81 = vector.broadcast %cst_41 : f32 to vector<8x128xf32>
    %82 = arith.addf %81, %80 : vector<8x128xf32>
    %83 = arith.mulf %77, %82 : vector<8x128xf32>
    %cst_42 = arith.constant 5.000000e-01 : f32
    %84 = vector.broadcast %cst_42 : f32 to vector<8x128xf32>
    %85 = arith.mulf %84, %77 : vector<8x128xf32>
    %86 = math.tanh %83 : vector<8x128xf32>
    %cst_43 = arith.constant 1.000000e+00 : f32
    %87 = vector.broadcast %cst_43 : f32 to vector<8x128xf32>
    %88 = arith.addf %86, %87 : vector<8x128xf32>
    %89 = arith.mulf %85, %88 : vector<8x128xf32>
    %c2_44 = arith.constant 2 : index
    %c0_45 = arith.constant 0 : index
    %c0_46 = arith.constant 0 : index
    %90 = vector.load %arg4[%c2_44, %c0_45, %c0_46] : memref<10x8x128xf32, #tpu.memory_space<vmem>>, vector<1x8x128xf32>
    %91 = vector.shape_cast %90 : vector<1x8x128xf32> to vector<8x128xf32>
    %92 = vector.shape_cast %89 : vector<8x128xf32> to vector<1x8x128xf32>
    tpu.vector_store %arg4[%c2_44, %c0_45, %c0_46], %92 {strides = array<i32>} : memref<10x8x128xf32, #tpu.memory_space<vmem>>, vector<1x8x128xf32>,
    %c3 = arith.constant 3 : index
    %c0_47 = arith.constant 0 : index
    %93 = memref.load %arg1[%c3, %c0_47] : memref<10x3xf32, #tpu.memory_space<smem>>
    %94 = vector.broadcast %93 : f32 to vector<8x128xf32>
    %95 = arith.mulf %1, %94 : vector<8x128xf32>
    %c3_48 = arith.constant 3 : index
    %96 = memref.load %arg2[%c3_48] : memref<10xf32, #tpu.memory_space<smem>>
    %97 = vector.broadcast %96 : f32 to vector<8x128xf32>
    %98 = arith.addf %95, %97 : vector<8x128xf32>
    %c3_49 = arith.constant 3 : index
    %c1_50 = arith.constant 1 : index
    %99 = memref.load %arg1[%c3_49, %c1_50] : memref<10x3xf32, #tpu.memory_space<smem>>
    %100 = vector.broadcast %99 : f32 to vector<8x128xf32>
    %101 = arith.mulf %3, %100 : vector<8x128xf32>
    %102 = arith.addf %98, %101 : vector<8x128xf32>
    %c3_51 = arith.constant 3 : index
    %c2_52 = arith.constant 2 : index
    %103 = memref.load %arg1[%c3_51, %c2_52] : memref<10x3xf32, #tpu.memory_space<smem>>
    %104 = vector.broadcast %103 : f32 to vector<8x128xf32>
    %105 = arith.mulf %5, %104 : vector<8x128xf32>
    %106 = arith.addf %102, %105 : vector<8x128xf32>
    %107 = arith.mulf %106, %106 : vector<8x128xf32>
    %cst_53 = arith.constant 0.0356774069 : f32
    %108 = vector.broadcast %cst_53 : f32 to vector<8x128xf32>
    %109 = arith.mulf %108, %107 : vector<8x128xf32>
    %cst_54 = arith.constant 0.797884583 : f32
    %110 = vector.broadcast %cst_54 : f32 to vector<8x128xf32>
    %111 = arith.addf %110, %109 : vector<8x128xf32>
    %112 = arith.mulf %106, %111 : vector<8x128xf32>
    %cst_55 = arith.constant 5.000000e-01 : f32
    %113 = vector.broadcast %cst_55 : f32 to vector<8x128xf32>
    %114 = arith.mulf %113, %106 : vector<8x128xf32>
    %115 = math.tanh %112 : vector<8x128xf32>
    %cst_56 = arith.constant 1.000000e+00 : f32
    %116 = vector.broadcast %cst_56 : f32 to vector<8x128xf32>
    %117 = arith.addf %115, %116 : vector<8x128xf32>
    %118 = arith.mulf %114, %117 : vector<8x128xf32>
    %c3_57 = arith.constant 3 : index
    %c0_58 = arith.constant 0 : index
    %c0_59 = arith.constant 0 : index
    %119 = vector.load %arg4[%c3_57, %c0_58, %c0_59] : memref<10x8x128xf32, #tpu.memory_space<vmem>>, vector<1x8x128xf32>
    %120 = vector.shape_cast %119 : vector<1x8x128xf32> to vector<8x128xf32>
    %121 = vector.shape_cast %118 : vector<8x128xf32> to vector<1x8x128xf32>
    tpu.vector_store %arg4[%c3_57, %c0_58, %c0_59], %121 {strides = array<i32>} : memref<10x8x128xf32, #tpu.memory_space<vmem>>, vector<1x8x128xf32>,
    %c4 = arith.constant 4 : index
    %c0_60 = arith.constant 0 : index
    %122 = memref.load %arg1[%c4, %c0_60] : memref<10x3xf32, #tpu.memory_space<smem>>
    %123 = vector.broadcast %122 : f32 to vector<8x128xf32>
    %124 = arith.mulf %1, %123 : vector<8x128xf32>
    %c4_61 = arith.constant 4 : index
    %125 = memref.load %arg2[%c4_61] : memref<10xf32, #tpu.memory_space<smem>>
    %126 = vector.broadcast %125 : f32 to vector<8x128xf32>
    %127 = arith.addf %124, %126 : vector<8x128xf32>
    %c4_62 = arith.constant 4 : index
    %c1_63 = arith.constant 1 : index
    %128 = memref.load %arg1[%c4_62, %c1_63] : memref<10x3xf32, #tpu.memory_space<smem>>
    %129 = vector.broadcast %128 : f32 to vector<8x128xf32>
    %130 = arith.mulf %3, %129 : vector<8x128xf32>
    %131 = arith.addf %127, %130 : vector<8x128xf32>
    %c4_64 = arith.constant 4 : index
    %c2_65 = arith.constant 2 : index
    %132 = memref.load %arg1[%c4_64, %c2_65] : memref<10x3xf32, #tpu.memory_space<smem>>
    %133 = vector.broadcast %132 : f32 to vector<8x128xf32>
    %134 = arith.mulf %5, %133 : vector<8x128xf32>
    %135 = arith.addf %131, %134 : vector<8x128xf32>
    %136 = arith.mulf %135, %135 : vector<8x128xf32>
    %cst_66 = arith.constant 0.0356774069 : f32
    %137 = vector.broadcast %cst_66 : f32 to vector<8x128xf32>
    %138 = arith.mulf %137, %136 : vector<8x128xf32>
    %cst_67 = arith.constant 0.797884583 : f32
    %139 = vector.broadcast %cst_67 : f32 to vector<8x128xf32>
    %140 = arith.addf %139, %138 : vector<8x128xf32>
    %141 = arith.mulf %135, %140 : vector<8x128xf32>
    %cst_68 = arith.constant 5.000000e-01 : f32
    %142 = vector.broadcast %cst_68 : f32 to vector<8x128xf32>
    %143 = arith.mulf %142, %135 : vector<8x128xf32>
    %144 = math.tanh %141 : vector<8x128xf32>
    %cst_69 = arith.constant 1.000000e+00 : f32
    %145 = vector.broadcast %cst_69 : f32 to vector<8x128xf32>
    %146 = arith.addf %144, %145 : vector<8x128xf32>
    %147 = arith.mulf %143, %146 : vector<8x128xf32>
    %c4_70 = arith.constant 4 : index
    %c0_71 = arith.constant 0 : index
    %c0_72 = arith.constant 0 : index
    %148 = vector.load %arg4[%c4_70, %c0_71, %c0_72] : memref<10x8x128xf32, #tpu.memory_space<vmem>>, vector<1x8x128xf32>
    %149 = vector.shape_cast %148 : vector<1x8x128xf32> to vector<8x128xf32>
    %150 = vector.shape_cast %147 : vector<8x128xf32> to vector<1x8x128xf32>
    tpu.vector_store %arg4[%c4_70, %c0_71, %c0_72], %150 {strides = array<i32>} : memref<10x8x128xf32, #tpu.memory_space<vmem>>, vector<1x8x128xf32>,
    %c5 = arith.constant 5 : index
    %c0_73 = arith.constant 0 : index
    %151 = memref.load %arg1[%c5, %c0_73] : memref<10x3xf32, #tpu.memory_space<smem>>
    %152 = vector.broadcast %151 : f32 to vector<8x128xf32>
    %153 = arith.mulf %1, %152 : vector<8x128xf32>
    %c5_74 = arith.constant 5 : index
    %154 = memref.load %arg2[%c5_74] : memref<10xf32, #tpu.memory_space<smem>>
    %155 = vector.broadcast %154 : f32 to vector<8x128xf32>
    %156 = arith.addf %153, %155 : vector<8x128xf32>
    %c5_75 = arith.constant 5 : index
    %c1_76 = arith.constant 1 : index
    %157 = memref.load %arg1[%c5_75, %c1_76] : memref<10x3xf32, #tpu.memory_space<smem>>
    %158 = vector.broadcast %157 : f32 to vector<8x128xf32>
    %159 = arith.mulf %3, %158 : vector<8x128xf32>
    %160 = arith.addf %156, %159 : vector<8x128xf32>
    %c5_77 = arith.constant 5 : index
    %c2_78 = arith.constant 2 : index
    %161 = memref.load %arg1[%c5_77, %c2_78] : memref<10x3xf32, #tpu.memory_space<smem>>
    %162 = vector.broadcast %161 : f32 to vector<8x128xf32>
    %163 = arith.mulf %5, %162 : vector<8x128xf32>
    %164 = arith.addf %160, %163 : vector<8x128xf32>
    %165 = arith.mulf %164, %164 : vector<8x128xf32>
    %cst_79 = arith.constant 0.0356774069 : f32
    %166 = vector.broadcast %cst_79 : f32 to vector<8x128xf32>
    %167 = arith.mulf %166, %165 : vector<8x128xf32>
    %cst_80 = arith.constant 0.797884583 : f32
    %168 = vector.broadcast %cst_80 : f32 to vector<8x128xf32>
    %169 = arith.addf %168, %167 : vector<8x128xf32>
    %170 = arith.mulf %164, %169 : vector<8x128xf32>
    %cst_81 = arith.constant 5.000000e-01 : f32
    %171 = vector.broadcast %cst_81 : f32 to vector<8x128xf32>
    %172 = arith.mulf %171, %164 : vector<8x128xf32>
    %173 = math.tanh %170 : vector<8x128xf32>
    %cst_82 = arith.constant 1.000000e+00 : f32
    %174 = vector.broadcast %cst_82 : f32 to vector<8x128xf32>
    %175 = arith.addf %173, %174 : vector<8x128xf32>
    %176 = arith.mulf %172, %175 : vector<8x128xf32>
    %c5_83 = arith.constant 5 : index
    %c0_84 = arith.constant 0 : index
    %c0_85 = arith.constant 0 : index
    %177 = vector.load %arg4[%c5_83, %c0_84, %c0_85] : memref<10x8x128xf32, #tpu.memory_space<vmem>>, vector<1x8x128xf32>
    %178 = vector.shape_cast %177 : vector<1x8x128xf32> to vector<8x128xf32>
    %179 = vector.shape_cast %176 : vector<8x128xf32> to vector<1x8x128xf32>
    tpu.vector_store %arg4[%c5_83, %c0_84, %c0_85], %179 {strides = array<i32>} : memref<10x8x128xf32, #tpu.memory_space<vmem>>, vector<1x8x128xf32>,
    %c6 = arith.constant 6 : index
    %c0_86 = arith.constant 0 : index
    %180 = memref.load %arg1[%c6, %c0_86] : memref<10x3xf32, #tpu.memory_space<smem>>
    %181 = vector.broadcast %180 : f32 to vector<8x128xf32>
    %182 = arith.mulf %1, %181 : vector<8x128xf32>
    %c6_87 = arith.constant 6 : index
    %183 = memref.load %arg2[%c6_87] : memref<10xf32, #tpu.memory_space<smem>>
    %184 = vector.broadcast %183 : f32 to vector<8x128xf32>
    %185 = arith.addf %182, %184 : vector<8x128xf32>
    %c6_88 = arith.constant 6 : index
    %c1_89 = arith.constant 1 : index
    %186 = memref.load %arg1[%c6_88, %c1_89] : memref<10x3xf32, #tpu.memory_space<smem>>
    %187 = vector.broadcast %186 : f32 to vector<8x128xf32>
    %188 = arith.mulf %3, %187 : vector<8x128xf32>
    %189 = arith.addf %185, %188 : vector<8x128xf32>
    %c6_90 = arith.constant 6 : index
    %c2_91 = arith.constant 2 : index
    %190 = memref.load %arg1[%c6_90, %c2_91] : memref<10x3xf32, #tpu.memory_space<smem>>
    %191 = vector.broadcast %190 : f32 to vector<8x128xf32>
    %192 = arith.mulf %5, %191 : vector<8x128xf32>
    %193 = arith.addf %189, %192 : vector<8x128xf32>
    %194 = arith.mulf %193, %193 : vector<8x128xf32>
    %cst_92 = arith.constant 0.0356774069 : f32
    %195 = vector.broadcast %cst_92 : f32 to vector<8x128xf32>
    %196 = arith.mulf %195, %194 : vector<8x128xf32>
    %cst_93 = arith.constant 0.797884583 : f32
    %197 = vector.broadcast %cst_93 : f32 to vector<8x128xf32>
    %198 = arith.addf %197, %196 : vector<8x128xf32>
    %199 = arith.mulf %193, %198 : vector<8x128xf32>
    %cst_94 = arith.constant 5.000000e-01 : f32
    %200 = vector.broadcast %cst_94 : f32 to vector<8x128xf32>
    %201 = arith.mulf %200, %193 : vector<8x128xf32>
    %202 = math.tanh %199 : vector<8x128xf32>
    %cst_95 = arith.constant 1.000000e+00 : f32
    %203 = vector.broadcast %cst_95 : f32 to vector<8x128xf32>
    %204 = arith.addf %202, %203 : vector<8x128xf32>
    %205 = arith.mulf %201, %204 : vector<8x128xf32>
    %c6_96 = arith.constant 6 : index
    %c0_97 = arith.constant 0 : index
    %c0_98 = arith.constant 0 : index
    %206 = vector.load %arg4[%c6_96, %c0_97, %c0_98] : memref<10x8x128xf32, #tpu.memory_space<vmem>>, vector<1x8x128xf32>
    %207 = vector.shape_cast %206 : vector<1x8x128xf32> to vector<8x128xf32>
    %208 = vector.shape_cast %205 : vector<8x128xf32> to vector<1x8x128xf32>
    tpu.vector_store %arg4[%c6_96, %c0_97, %c0_98], %208 {strides = array<i32>} : memref<10x8x128xf32, #tpu.memory_space<vmem>>, vector<1x8x128xf32>,
    %c7 = arith.constant 7 : index
    %c0_99 = arith.constant 0 : index
    %209 = memref.load %arg1[%c7, %c0_99] : memref<10x3xf32, #tpu.memory_space<smem>>
    %210 = vector.broadcast %209 : f32 to vector<8x128xf32>
    %211 = arith.mulf %1, %210 : vector<8x128xf32>
    %c7_100 = arith.constant 7 : index
    %212 = memref.load %arg2[%c7_100] : memref<10xf32, #tpu.memory_space<smem>>
    %213 = vector.broadcast %212 : f32 to vector<8x128xf32>
    %214 = arith.addf %211, %213 : vector<8x128xf32>
    %c7_101 = arith.constant 7 : index
    %c1_102 = arith.constant 1 : index
    %215 = memref.load %arg1[%c7_101, %c1_102] : memref<10x3xf32, #tpu.memory_space<smem>>
    %216 = vector.broadcast %215 : f32 to vector<8x128xf32>
    %217 = arith.mulf %3, %216 : vector<8x128xf32>
    %218 = arith.addf %214, %217 : vector<8x128xf32>
    %c7_103 = arith.constant 7 : index
    %c2_104 = arith.constant 2 : index
    %219 = memref.load %arg1[%c7_103, %c2_104] : memref<10x3xf32, #tpu.memory_space<smem>>
    %220 = vector.broadcast %219 : f32 to vector<8x128xf32>
    %221 = arith.mulf %5, %220 : vector<8x128xf32>
    %222 = arith.addf %218, %221 : vector<8x128xf32>
    %223 = arith.mulf %222, %222 : vector<8x128xf32>
    %cst_105 = arith.constant 0.0356774069 : f32
    %224 = vector.broadcast %cst_105 : f32 to vector<8x128xf32>
    %225 = arith.mulf %224, %223 : vector<8x128xf32>
    %cst_106 = arith.constant 0.797884583 : f32
    %226 = vector.broadcast %cst_106 : f32 to vector<8x128xf32>
    %227 = arith.addf %226, %225 : vector<8x128xf32>
    %228 = arith.mulf %222, %227 : vector<8x128xf32>
    %cst_107 = arith.constant 5.000000e-01 : f32
    %229 = vector.broadcast %cst_107 : f32 to vector<8x128xf32>
    %230 = arith.mulf %229, %222 : vector<8x128xf32>
    %231 = math.tanh %228 : vector<8x128xf32>
    %cst_108 = arith.constant 1.000000e+00 : f32
    %232 = vector.broadcast %cst_108 : f32 to vector<8x128xf32>
    %233 = arith.addf %231, %232 : vector<8x128xf32>
    %234 = arith.mulf %230, %233 : vector<8x128xf32>
    %c7_109 = arith.constant 7 : index
    %c0_110 = arith.constant 0 : index
    %c0_111 = arith.constant 0 : index
    %235 = vector.load %arg4[%c7_109, %c0_110, %c0_111] : memref<10x8x128xf32, #tpu.memory_space<vmem>>, vector<1x8x128xf32>
    %236 = vector.shape_cast %235 : vector<1x8x128xf32> to vector<8x128xf32>
    %237 = vector.shape_cast %234 : vector<8x128xf32> to vector<1x8x128xf32>
    tpu.vector_store %arg4[%c7_109, %c0_110, %c0_111], %237 {strides = array<i32>} : memref<10x8x128xf32, #tpu.memory_space<vmem>>, vector<1x8x128xf32>,
    %c8 = arith.constant 8 : index
    %c0_112 = arith.constant 0 : index
    %238 = memref.load %arg1[%c8, %c0_112] : memref<10x3xf32, #tpu.memory_space<smem>>
    %239 = vector.broadcast %238 : f32 to vector<8x128xf32>
    %240 = arith.mulf %1, %239 : vector<8x128xf32>
    %c8_113 = arith.constant 8 : index
    %241 = memref.load %arg2[%c8_113] : memref<10xf32, #tpu.memory_space<smem>>
    %242 = vector.broadcast %241 : f32 to vector<8x128xf32>
    %243 = arith.addf %240, %242 : vector<8x128xf32>
    %c8_114 = arith.constant 8 : index
    %c1_115 = arith.constant 1 : index
    %244 = memref.load %arg1[%c8_114, %c1_115] : memref<10x3xf32, #tpu.memory_space<smem>>
    %245 = vector.broadcast %244 : f32 to vector<8x128xf32>
    %246 = arith.mulf %3, %245 : vector<8x128xf32>
    %247 = arith.addf %243, %246 : vector<8x128xf32>
    %c8_116 = arith.constant 8 : index
    %c2_117 = arith.constant 2 : index
    %248 = memref.load %arg1[%c8_116, %c2_117] : memref<10x3xf32, #tpu.memory_space<smem>>
    %249 = vector.broadcast %248 : f32 to vector<8x128xf32>
    %250 = arith.mulf %5, %249 : vector<8x128xf32>
    %251 = arith.addf %247, %250 : vector<8x128xf32>
    %252 = arith.mulf %251, %251 : vector<8x128xf32>
    %cst_118 = arith.constant 0.0356774069 : f32
    %253 = vector.broadcast %cst_118 : f32 to vector<8x128xf32>
    %254 = arith.mulf %253, %252 : vector<8x128xf32>
    %cst_119 = arith.constant 0.797884583 : f32
    %255 = vector.broadcast %cst_119 : f32 to vector<8x128xf32>
    %256 = arith.addf %255, %254 : vector<8x128xf32>
    %257 = arith.mulf %251, %256 : vector<8x128xf32>
    %cst_120 = arith.constant 5.000000e-01 : f32
    %258 = vector.broadcast %cst_120 : f32 to vector<8x128xf32>
    %259 = arith.mulf %258, %251 : vector<8x128xf32>
    %260 = math.tanh %257 : vector<8x128xf32>
    %cst_121 = arith.constant 1.000000e+00 : f32
    %261 = vector.broadcast %cst_121 : f32 to vector<8x128xf32>
    %262 = arith.addf %260, %261 : vector<8x128xf32>
    %263 = arith.mulf %259, %262 : vector<8x128xf32>
    %c8_122 = arith.constant 8 : index
    %c0_123 = arith.constant 0 : index
    %c0_124 = arith.constant 0 : index
    %264 = vector.load %arg4[%c8_122, %c0_123, %c0_124] : memref<10x8x128xf32, #tpu.memory_space<vmem>>, vector<1x8x128xf32>
    %265 = vector.shape_cast %264 : vector<1x8x128xf32> to vector<8x128xf32>
    %266 = vector.shape_cast %263 : vector<8x128xf32> to vector<1x8x128xf32>
    tpu.vector_store %arg4[%c8_122, %c0_123, %c0_124], %266 {strides = array<i32>} : memref<10x8x128xf32, #tpu.memory_space<vmem>>, vector<1x8x128xf32>,
    %c9 = arith.constant 9 : index
    %c0_125 = arith.constant 0 : index
    %267 = memref.load %arg1[%c9, %c0_125] : memref<10x3xf32, #tpu.memory_space<smem>>
    %268 = vector.broadcast %267 : f32 to vector<8x128xf32>
    %269 = arith.mulf %1, %268 : vector<8x128xf32>
    %c9_126 = arith.constant 9 : index
    %270 = memref.load %arg2[%c9_126] : memref<10xf32, #tpu.memory_space<smem>>
    %271 = vector.broadcast %270 : f32 to vector<8x128xf32>
    %272 = arith.addf %269, %271 : vector<8x128xf32>
    %c9_127 = arith.constant 9 : index
    %c1_128 = arith.constant 1 : index
    %273 = memref.load %arg1[%c9_127, %c1_128] : memref<10x3xf32, #tpu.memory_space<smem>>
    %274 = vector.broadcast %273 : f32 to vector<8x128xf32>
    %275 = arith.mulf %3, %274 : vector<8x128xf32>
    %276 = arith.addf %272, %275 : vector<8x128xf32>
    %c9_129 = arith.constant 9 : index
    %c2_130 = arith.constant 2 : index
    %277 = memref.load %arg1[%c9_129, %c2_130] : memref<10x3xf32, #tpu.memory_space<smem>>
    %278 = vector.broadcast %277 : f32 to vector<8x128xf32>
    %279 = arith.mulf %5, %278 : vector<8x128xf32>
    %280 = arith.addf %276, %279 : vector<8x128xf32>
    %281 = arith.mulf %280, %280 : vector<8x128xf32>
    %cst_131 = arith.constant 0.0356774069 : f32
    %282 = vector.broadcast %cst_131 : f32 to vector<8x128xf32>
    %283 = arith.mulf %282, %281 : vector<8x128xf32>
    %cst_132 = arith.constant 0.797884583 : f32
    %284 = vector.broadcast %cst_132 : f32 to vector<8x128xf32>
    %285 = arith.addf %284, %283 : vector<8x128xf32>
    %286 = arith.mulf %280, %285 : vector<8x128xf32>
    %cst_133 = arith.constant 5.000000e-01 : f32
    %287 = vector.broadcast %cst_133 : f32 to vector<8x128xf32>
    %288 = arith.mulf %287, %280 : vector<8x128xf32>
    %289 = math.tanh %286 : vector<8x128xf32>
    %cst_134 = arith.constant 1.000000e+00 : f32
    %290 = vector.broadcast %cst_134 : f32 to vector<8x128xf32>
    %291 = arith.addf %289, %290 : vector<8x128xf32>
    %292 = arith.mulf %288, %291 : vector<8x128xf32>
    %c9_135 = arith.constant 9 : index
    %c0_136 = arith.constant 0 : index
    %c0_137 = arith.constant 0 : index
    %293 = vector.load %arg4[%c9_135, %c0_136, %c0_137] : memref<10x8x128xf32, #tpu.memory_space<vmem>>, vector<1x8x128xf32>
    %294 = vector.shape_cast %293 : vector<1x8x128xf32> to vector<8x128xf32>
    %295 = vector.shape_cast %292 : vector<8x128xf32> to vector<1x8x128xf32>
    tpu.vector_store %arg4[%c9_135, %c0_136, %c0_137], %295 {strides = array<i32>} : memref<10x8x128xf32, #tpu.memory_space<vmem>>, vector<1x8x128xf32>,
    return
  }
  func.func @transform_0(%arg0: i32) -> (i32, i32) {
    %c0_i32 = arith.constant 0 : i32
    %c0_i32_0 = arith.constant 0 : i32
    %c0_i32_1 = arith.constant 0 : i32
    return %c0_i32, %c0_i32_0 : i32, i32
  }
  func.func @transform_1(%arg0: i32) -> i32 {
    %c0_i32 = arith.constant 0 : i32
    %c0_i32_0 = arith.constant 0 : i32
    return %c0_i32 : i32
  }
  func.func @transform_2(%arg0: i32) -> (i32, i32, i32) {
    %c0_i32 = arith.constant 0 : i32
    %c0_i32_0 = arith.constant 0 : i32
    %c0_i32_1 = arith.constant 0 : i32
    return %c0_i32, %arg0, %c0_i32_0 : i32, i32, i32
  }
  func.func @transform_3(%arg0: i32) -> (i32, i32, i32) {
    %c0_i32 = arith.constant 0 : i32
    %c0_i32_0 = arith.constant 0 : i32
    %c0_i32_1 = arith.constant 0 : i32
    return %c0_i32, %arg0, %c0_i32_0 : i32, i32, i32
  }
}

</mosaic_0001>

<bundles_post_ra>
// kernel: tpu_custom_call.1
= control target key start
LH: loop header
LB: loop body
LE: loop exit
PB: predicated region body
PF: predicated region fallthrough
CT: control target
= control target key end

     0   :  { %8 = vsyncpa [#allocation4], 0  ;;  %s650_s0 = inlined_call_operand.vmem [shape: f32[10,3], index: 0, kind: input, shape index: {}]   ;;  %s651_s1 = inlined_call_operand.vmem [shape: f32[10], index: 1, kind: input, shape index: {}]   ;;  %s652_s2 = inlined_call_operand.vmem [shape: f32[3,8,128], index: 2, kind: input, shape index: {}]   ;;  %s653_s3 = inlined_call_operand.hbm [shape: f32[10,8,128], index: 3, kind: output, shape index: {}]  }
   0x1   :  { %9 = vsyncpa [#allocation6], 0 }
   0x2   :  { %10 = vsyncpa [#allocation3], 0  ;;  %s16_s14 = sshll.u32 %s650_s0, 4  ;;  %s29_s17 = sshll.u32 %s651_s1, 4  ;;  %s17_s14 = int_to_ptr.vmem [resolvable:$true] %s16_s14  ;;  %s30_s17 = int_to_ptr.vmem [resolvable:$true] %s29_s17 }
   0x3   :  { %s369_s18 = scalar_lea.vmem %s17_s14, 256  ;;  %p374_p1 = scmp.lt.s32.totalorder %s17_s14, %s17_s14 }
   0x4   :  { %p370_p0 = scmp.ne.s32.totalorder %s17_s14, %s369_s18  ;;  %p375_p2 = scmp.lt.s32.totalorder %s369_s18, %s369_s18 }
   0x6   :  { %p376_p3 = por %p375_p2, %p374_p1 }
   0x8   :  { %p377_p4 = pnand %p376_p3, %p370_p0 }
   0xa   :  { %380 = shalt.err (!%p377_p4)
}
   0xb   :  { %s421_s19 = smov [#allocation2]   ;;  %s422_s20 = smov 128  }
   0xc   :  { %s423_s21 = smov 8   ;;  %s381_s0 = scalar_lea.vmem %s30_s17, 16 }
   0xd   :  { %22 = dma.vmem_to_smem %s17_s14, 256, %s421_s19, [#allocation4], %s422_s20, %s422_s20, %s423_s21  }
   0xe   :  { %p382_p5 = scmp.ne.s32.totalorder %s30_s17, %s381_s0  ;;  %p386_p6 = scmp.lt.s32.totalorder %s30_s17, %s30_s17 }
   0xf   :  { %p387_p7 = scmp.lt.s32.totalorder %s381_s0, %s381_s0 }
  0x11   :  { %p388_p8 = por %p387_p7, %p386_p6 }
  0x13   :  { %p389_p9 = pnand %p388_p8, %p382_p5 }
  0x15   :  { %392 = shalt.err (!%p389_p9)
}
  0x16   :  { %s424_s1 = smov [#allocation5]  }
  0x17   :  { %32 = dma.vmem_to_smem %s30_s17, 16, %s424_s1, [#allocation6]  }
  0x18   :  { %415 = dma.done.wait [#allocation4], 256  }
  0x19   :  { %416 = vsyncadd [#allocation4], 4294967040 }
  0x1a   :  { %417 = dma.done.wait [#allocation6], 16  }
  0x1b   :  { %418 = vsyncadd [#allocation6], 4294967280 }
  0x1c   :  { %41 = sfence }
  0x1d   :  { %s47_s22 = sld [smem:[#allocation2]]  ;;  %s306_s24 = sld [smem:[#allocation2 + $0x1]]  ;;  %v462_v0 = vld [vmem:[%s652_s2] sm:$0xff]  ;;  %v469_v1 = vld [vmem:[%s652_s2 + $0x8] sm:$0xff]  ;;  %v478_v2 = vld [vmem:[%s652_s2 + $0x10] sm:$0xff] }
  0x1e   :  { %s50_s23 = sld [smem:[#allocation5]]  ;;  %s307_s25 = sld [smem:[#allocation2 + $0x2]] }
  0x1f   :  { %s308_s26 = sld [smem:[#allocation2 + $0x80]]  ;;  %s455_s27 = sld [smem:[#allocation5 + $0x1]] }
  0x20   :  { %s457_s28 = sld [smem:[#allocation2 + $0x81]]  ;;  %s311_s4 = sld [smem:[#allocation2 + $0x82]] }
  0x21   :  { %s464_s5 = sld [smem:[#allocation2 + $0x100]]  ;;  %s471_s8 = sld [smem:[#allocation5 + $0x2]] }
  0x22   :  { %s473_s9 = sld [smem:[#allocation2 + $0x101]]  ;;  %s480_s12 = sld [smem:[#allocation2 + $0x102]] }
  0x23   :  { %v48_v3 = vstv %s47_s22  ;;  %s482_s13 = sld [smem:[#allocation2 + $0x180]]  ;;  %v54_v6 = vstv %s306_s24  ;;  %s485_s14 = sld [smem:[#allocation5 + $0x3]] }
  0x24   :  { %v49_v4 = vmul.f32 %v48_v3, %v462_v0  ;;  %v51_v5 = vstv %s50_s23  ;;  %s487_s15 = sld [smem:[#allocation2 + $0x181]]  ;;  %v55_v7 = vmul.f32 %v469_v1, %v54_v6  ;;  %v58_v8 = vstv %s307_s25  ;;  %s490_s2 = sld [smem:[#allocation2 + $0x182]] }
  0x25   :  { %v71_v9 = vstv %s308_s26  ;;  %s492_s16 = sld [smem:[#allocation2 + $0x200]]  ;;  %v59_v11 = vmul.f32 %v478_v2, %v58_v8  ;;  %v74_v13 = vstv %s455_s27  ;;  %s499_s17 = sld [smem:[#allocation5 + $0x4]] }
  0x26   :  { %v52_v10 = vadd.f32 %v51_v5, %v49_v4  ;;  %v72_v12 = vmul.f32 %v71_v9, %v462_v0  ;;  %v77_v14 = vstv %s457_s28  ;;  %v81_v15 = vstv %s311_s4  ;;  %s503_s18 = sld [smem:[#allocation2 + $0x201]]  ;;  %s511_s19 = sld [smem:[#allocation2 + $0x202]] }
  0x27   :  { %v95_v16 = vstv %s464_s5  ;;  %v78_v19 = vmul.f32 %v469_v1, %v77_v14  ;;  %v82_v20 = vmul.f32 %v478_v2, %v81_v15  ;;  %v98_v22 = vstv %s471_s8  ;;  %s516_s0 = sld [smem:[#allocation2 + $0x280]]  ;;  %s522_s1 = sld [smem:[#allocation5 + $0x5]] }
  0x28   :  { %v56_v17 = vadd.f32 %v55_v7, %v52_v10  ;;  %v75_v18 = vadd.f32 %v74_v13, %v72_v12  ;;  %v96_v21 = vmul.f32 %v95_v16, %v462_v0  ;;  %v101_v23 = vstv %s473_s9  ;;  %s524_s22 = sld [smem:[#allocation2 + $0x281]]  ;;  %s526_s23 = sld [smem:[#allocation2 + $0x282]] }
  0x29   :  { %v105_v24 = vstv %s480_s12  ;;  %v102_v27 = vmul.f32 %v469_v1, %v101_v23  ;;  %v119_v30 = vstv %s482_s13  ;;  %v122_v31 = vstv %s485_s14  ;;  %s534_s24 = sld [smem:[#allocation2 + $0x300]]  ;;  %s539_s25 = sld [smem:[#allocation5 + $0x6]] }
  0x2a   :  { %v60_v25 = vadd.f32 %v59_v11, %v56_v17  ;;  %v79_v26 = vadd.f32 %v78_v19, %v75_v18  ;;  %v106_v28 = vmul.f32 %v478_v2, %v105_v24  ;;  %v99_v29 = vadd.f32 %v98_v22, %v96_v21  ;;  %s544_s26 = sld [smem:[#allocation2 + $0x301]]  ;;  %s546_s27 = sld [smem:[#allocation2 + $0x302]] }
  0x2b   :  { %v125_v32 = vstv %s487_s15  ;;  %v120_v35 = vmul.f32 %v119_v30, %v462_v0  ;;  %v129_v38 = vstv %s490_s2  ;;  %v143_v39 = vstv %s492_s16  ;;  %s554_s28 = sld [smem:[#allocation2 + $0x380]]  ;;  %s556_s29 = sld [smem:[#allocation5 + $0x7]] }
  0x2c   :  { %v61_v33 = vmul.f32 %v60_v25, %v60_v25  ;;  %v83_v34 = vadd.f32 %v82_v20, %v79_v26  ;;  %v103_v36 = vadd.f32 %v102_v27, %v99_v29  ;;  %v126_v37 = vmul.f32 %v469_v1, %v125_v32  ;;  %s562_s30 = sld [smem:[#allocation2 + $0x381]]  ;;  %s566_s4 = sld [smem:[#allocation2 + $0x382]] }
  0x2d   :  { %v123_v42 = vadd.f32 %v122_v31, %v120_v35  ;;  %v130_v44 = vmul.f32 %v478_v2, %v129_v38  ;;  %v144_v45 = vmul.f32 %v143_v39, %v462_v0  ;;  %v146_v46 = vstv %s499_s17  ;;  %s574_s5 = sld [smem:[#allocation2 + $0x400]]  ;;  %s583_s7 = sld [smem:[#allocation2 + $0x401]] }
  0x2e   :  { %v62_v40 = vmul.f32 0.035677407, %v61_v33  ;;  %v84_v41 = vmul.f32 %v83_v34, %v83_v34  ;;  %v528_v43 = vadd.f32 %v106_v28, %v103_v36  ;;  %v149_v50 = vstv %s503_s18  ;;  %s578_s6 = sld [smem:[#allocation5 + $0x8]]  ;;  %s587_s8 = sld [smem:[#allocation2 + $0x402]] }
  0x2f   :  { %v127_v49 = vadd.f32 %v126_v37, %v123_v42  ;;  %v147_v52 = vadd.f32 %v146_v46, %v144_v45  ;;  %v150_v53 = vmul.f32 %v469_v1, %v149_v50  ;;  %v153_v57 = vstv %s511_s19  ;;  %s596_s9 = sld [smem:[#allocation2 + $0x480]]  ;;  %s603_s10 = sld [smem:[#allocation5 + $0x9]] }
  0x30   :  { %v63_v47 = vadd.f32 0.7978846, %v62_v40  ;;  %v85_v48 = vmul.f32 0.035677407, %v84_v41  ;;  %v108_v51 = vmul.f32 %v528_v43, %v528_v43  ;;  %v154_v60 = vmul.f32 %v478_v2, %v153_v57  ;;  %s609_s11 = sld [smem:[#allocation2 + $0x481]]  ;;  %s611_s12 = sld [smem:[#allocation2 + $0x482]] }
  0x31   :  { %v541_v56 = vadd.f32 %v130_v44, %v127_v49  ;;  %v151_v59 = vadd.f32 %v150_v53, %v147_v52  ;;  %v167_v61 = vstv %s516_s0  ;;  %v550_v62 = vmul.f32 0.5, %v60_v25  ;;  %s425_s13 = smov [#allocation7]  }
  0x32   :  { %v64_v54 = vmul.f32 %v63_v47, %v60_v25  ;;  %v86_v55 = vadd.f32 0.7978846, %v85_v48  ;;  %v109_v58 = vmul.f32 0.035677407, %v108_v51  ;;  %v168_v6 = vmul.f32 %v167_v61, %v462_v0  ;;  %s291_s14 = sshll.u32 %s425_s13, 4  ;;  %s292_s14 = int_to_ptr.vmem [resolvable:$true] %s291_s14 }
  0x33   :  { %v132_v3 = vmul.f32 %v541_v56, %v541_v56  ;;  %v558_v5 = vadd.f32 %v154_v60, %v151_v59  ;;  %v170_v7 = vstv %s522_s1  ;;  %v173_v9 = vstv %s524_s22  ;;  %s393_s15 = scalar_lea.vmem %s292_s14, 1280  ;;  %p398_p11 = scmp.lt.s32.totalorder %s292_s14, %s292_s14 }
  0x34   :  { %349 = vtanh.f32 %v64_v54  ;;  %v87_v63 = vmul.f32 %v86_v55, %v83_v34  ;;  %v110_v4 = vadd.f32 0.7978846, %v109_v58  ;;  %v177_v10 = vstv %s526_s23  ;;  %p394_p10 = scmp.ne.s32.totalorder %s292_s14, %s393_s15  ;;  %p399_p12 = scmp.lt.s32.totalorder %s393_s15, %s393_s15 }
  0x35   :  { %v133_v8 = vmul.f32 0.035677407, %v132_v3  ;;  %v88_v11 = vmul.f32 0.5, %v83_v34  ;;  %v156_v13 = vmul.f32 %v558_v5, %v558_v5  ;;  %v171_v14 = vadd.f32 %v170_v7, %v168_v6 }
  0x36   :  { %351 = vtanh.f32 %v87_v63  ;;  %v111_v12 = vmul.f32 %v110_v4, %v528_v43  ;;  %v174_v16 = vmul.f32 %v469_v1, %v173_v9  ;;  %v178_v17 = vmul.f32 %v478_v2, %v177_v10  ;;  %p400_p13 = por %p399_p12, %p398_p11 }
  0x37   :  { %v134_v15 = vadd.f32 0.7978846, %v133_v8  ;;  %v191_v18 = vstv %s534_s24  ;;  %v157_v19 = vmul.f32 0.035677407, %v156_v13  ;;  %v194_v21 = vstv %s539_s25 }
  0x38   :  { %353 = vtanh.f32 %v111_v12  ;;  %v192_v20 = vmul.f32 %v191_v18, %v462_v0  ;;  %v175_v23 = vadd.f32 %v174_v16, %v171_v14  ;;  %v197_v24 = vstv %s544_s26  ;;  %p401_p0 = pnand %p400_p13, %p394_p10 }
  0x39   :  { %v135_v22 = vmul.f32 %v134_v15, %v541_v56  ;;  %v201_v25 = vstv %s546_s27  ;;  %v158_v26 = vadd.f32 0.7978846, %v157_v19  ;;  %v198_v28 = vmul.f32 %v469_v1, %v197_v24 }
  0x3a   :  { %v195_v27 = vadd.f32 %v194_v21, %v192_v20  ;;  %v202_v29 = vmul.f32 %v478_v2, %v201_v25  ;;  %v589_v30 = vadd.f32 %v178_v17, %v175_v23  ;;  %v215_v31 = vstv %s554_s28 }
  0x3b   :  { %355 = vtanh.f32 %v135_v22  ;;  %v218_v32 = vstv %s556_s29  ;;  %v159_v33 = vmul.f32 %v158_v26, %v558_v5  ;;  %v216_v35 = vmul.f32 %v215_v31, %v462_v0 }
  0x3c   :  { %v199_v34 = vadd.f32 %v198_v28, %v195_v27  ;;  %v221_v36 = vstv %s562_s30  ;;  %v112_v38 = vmul.f32 0.5, %v528_v43  ;;  %v180_v39 = vmul.f32 %v589_v30, %v589_v30 }
  0x3d   :  { %v222_v40 = vmul.f32 %v469_v1, %v221_v36  ;;  %v225_v41 = vstv %s566_s4  ;;  %357 = vtanh.f32 %v159_v33  ;;  %v219_v45 = vadd.f32 %v218_v32, %v216_v35 }
  0x3e   :  { %v350_v37 = vpop.eup %349  ;;  %v605_v44 = vadd.f32 %v202_v29, %v199_v34  ;;  %v181_v47 = vmul.f32 0.035677407, %v180_v39  ;;  %v226_v48 = vmul.f32 %v478_v2, %v225_v41  ;;  %v239_v43 = vstv %s574_s5 }
  0x3f   :  { %v67_v42 = vadd.f32 1.0, %v350_v37  ;;  %v242_v52 = vstv %s578_s6  ;;  %v223_v54 = vadd.f32 %v222_v40, %v219_v45  ;;  %v240_v55 = vmul.f32 %v239_v43, %v462_v0 }
  0x40   :  { %v352_v46 = vpop.eup %351  ;;  %v204_v51 = vmul.f32 %v605_v44, %v605_v44  ;;  %v182_v53 = vadd.f32 0.7978846, %v181_v47  ;;  %v245_v57 = vstv %s583_s7  ;;  %v249_v63 = vstv %s587_s8 }
  0x41   :  { %v68_v49 = vmul.f32 %v67_v42, %v550_v62  ;;  %v90_v50 = vadd.f32 1.0, %v352_v46  ;;  %v246_v61 = vmul.f32 %v469_v1, %v245_v57  ;;  %v227_v4 = vadd.f32 %v226_v48, %v223_v54 }
  0x42   :  { %v354_v58 = vpop.eup %353  ;;  %v205_v60 = vmul.f32 0.035677407, %v204_v51  ;;  %v183_v3 = vmul.f32 %v182_v53, %v589_v30  ;;  %v243_v6 = vadd.f32 %v242_v52, %v240_v55  ;;  %v136_v7 = vmul.f32 0.5, %v541_v56 }
  0x43   :  { %69 = vst [vmem:[#allocation7] sm:$0xff] %v68_v49  ;;  %v91_v59 = vmul.f32 %v90_v50, %v88_v11  ;;  %v114_v62 = vadd.f32 1.0, %v354_v58  ;;  %v250_v9 = vmul.f32 %v478_v2, %v249_v63  ;;  %v263_v10 = vstv %s596_s9 }
  0x44   :  { %v206_v8 = vadd.f32 0.7978846, %v205_v60  ;;  %359 = vtanh.f32 %v183_v3  ;;  %v228_v13 = vmul.f32 %v227_v4, %v227_v4  ;;  %v266_v14 = vstv %s603_s10 }
  0x45   :  { %93 = vst [vmem:[#allocation7 + $0x8] sm:$0xff] %v91_v59  ;;  %v356_v11 = vpop.eup %355  ;;  %v115_v12 = vmul.f32 %v114_v62, %v112_v38  ;;  %v247_v17 = vadd.f32 %v246_v61, %v243_v6  ;;  %v264_v18 = vmul.f32 %v263_v10, %v462_v0  ;;  %v160_v56 = vmul.f32 0.5, %v558_v5 }
  0x46   :  { %v138_v15 = vadd.f32 1.0, %v356_v11  ;;  %v207_v16 = vmul.f32 %v206_v8, %v605_v44  ;;  %v229_v19 = vmul.f32 0.035677407, %v228_v13  ;;  %v269_v20 = vstv %s609_s11 }
  0x47   :  { %117 = vst [vmem:[#allocation7 + $0x10] sm:$0xff] %v115_v12  ;;  %v273_v21 = vstv %s611_s12  ;;  %v358_v22 = vpop.eup %357  ;;  %v251_v24 = vadd.f32 %v250_v9, %v247_v17  ;;  %v267_v25 = vadd.f32 %v266_v14, %v264_v18  ;;  %v270_v28 = vmul.f32 %v469_v1, %v269_v20 }
  0x48   :  { %v139_v23 = vmul.f32 %v138_v15, %v136_v7  ;;  %361 = vtanh.f32 %v207_v16  ;;  %v162_v26 = vadd.f32 1.0, %v358_v22  ;;  %v230_v27 = vadd.f32 0.7978846, %v229_v19 }
  0x49   :  { %v274_v29 = vmul.f32 %v478_v2, %v273_v21  ;;  %v252_v31 = vmul.f32 %v251_v24, %v251_v24  ;;  %v271_v33 = vadd.f32 %v270_v28, %v267_v25  ;;  %v184_v35 = vmul.f32 0.5, %v589_v30 }
  0x4a   :  { %141 = vst [vmem:[#allocation7 + $0x18] sm:$0xff] %v139_v23  ;;  %v163_v0 = vmul.f32 %v162_v26, %v160_v56  ;;  %v231_v32 = vmul.f32 %v230_v27, %v227_v4  ;;  %v208_v1 = vmul.f32 0.5, %v605_v44  ;;  %v232_v43 = vmul.f32 0.5, %v227_v4 }
  0x4b   :  { %v253_v5 = vmul.f32 0.035677407, %v252_v31  ;;  %v275_v34 = vadd.f32 %v274_v29, %v271_v33  ;;  %v256_v51 = vmul.f32 0.5, %v251_v24 }
  0x4c   :  { %165 = vst [vmem:[#allocation7 + $0x20] sm:$0xff] %v163_v0  ;;  %363 = vtanh.f32 %v231_v32 }
  0x4d   :  { %v254_v36 = vadd.f32 0.7978846, %v253_v5  ;;  %v276_v38 = vmul.f32 %v275_v34, %v275_v34  ;;  %v280_v54 = vmul.f32 0.5, %v275_v34 }
  0x4e   :  { %v360_v37 = vpop.eup %359 }
  0x4f   :  { %v186_v39 = vadd.f32 1.0, %v360_v37  ;;  %v255_v40 = vmul.f32 %v254_v36, %v251_v24  ;;  %v277_v41 = vmul.f32 0.035677407, %v276_v38 }
  0x51   :  { %v187_v42 = vmul.f32 %v186_v39, %v184_v35  ;;  %365 = vtanh.f32 %v255_v40  ;;  %v278_v46 = vadd.f32 0.7978846, %v277_v41 }
  0x52   :  { %v362_v2 = vpop.eup %361 }
  0x53   :  { %v210_v45 = vadd.f32 1.0, %v362_v2  ;;  %189 = vst [vmem:[#allocation7 + $0x28] sm:$0xff] %v187_v42  ;;  %v279_v48 = vmul.f32 %v278_v46, %v275_v34 }
  0x55   :  { %v211_v47 = vmul.f32 %v210_v45, %v208_v1  ;;  %367 = vtanh.f32 %v279_v48 }
  0x56   :  { %v364_v49 = vpop.eup %363 }
  0x57   :  { %213 = vst [vmem:[#allocation7 + $0x30] sm:$0xff] %v211_v47  ;;  %v234_v30 = vadd.f32 1.0, %v364_v49 }
  0x59   :  { %v235_v50 = vmul.f32 %v234_v30, %v232_v43 }
  0x5b   :  { %v366_v52 = vpop.eup %365  ;;  %237 = vst [vmem:[#allocation7 + $0x38] sm:$0xff] %v235_v50 }
  0x5c   :  { %v258_v53 = vadd.f32 1.0, %v366_v52 }
  0x5e   :  { %v259_v44 = vmul.f32 %v258_v53, %v256_v51 }
  0x5f   :  { %v368_v55 = vpop.eup %367 }
  0x60   :  { %261 = vst [vmem:[#allocation7 + $0x40] sm:$0xff] %v259_v44  ;;  %v282_v57 = vadd.f32 1.0, %v368_v55 }
  0x62   :  { %v283_v58 = vmul.f32 %v282_v57, %v280_v54 }
  0x64   :  { %285 = vst [vmem:[#allocation7 + $0x48] sm:$0xff] %v283_v58 }
  0x65   :  { %404 = shalt.err (!%p401_p0)
}
  0x66   :  { %s405_s17 = scalar_lea.hbm %s653_s3, 1280 }
  0x67   :  { %p406_p1 = scmp.ne.s32.totalorder %s653_s3, %s405_s17  ;;  %p409_p2 = scmp.lt.u32.totalorder %s405_s17, %s653_s3 }
  0x69   :  { %p411_p3 = pnand %p409_p2, %p406_p1 }
  0x6b   :  { %414 = shalt.err (!%p411_p3)
}
  0x6c   :  { %297 = dma.vmem_to_hbm [thread:$0]  %s292_s14, 1280, %s653_s3, [#allocation3], %s422_s20, %s422_s20, %s423_s21  }
  0x6d   :  { %419 = dma.done.wait [#allocation3], 1280  }
  0x6e   :  { %420 = vsyncadd [#allocation3], 4294966016 }
  0x6f   :  { %301 = vsyncpa [#allocation3], 1 }
  0x70   :  { %302 = vsyncpa [#allocation4], 1 }
  0x71   :  { %303 = vsyncpa [#allocation6], 1 }

</bundles_post_ra>
